<compile_context>
chip_gen: v6e
topology: v6e:2x2x1
jax: 0.10.0
libtpu: 0.0.40
codegen_flags: <defaults>
</compile_context>

<pallas_src>
import jax
import jax.numpy as jnp
from jax.experimental import pallas as pl
from jax.experimental.pallas import tpu as pltpu


IN_FEATURES = 841          # 29 * 29 (in_sz=841)
H1, H2, OUT = 120, 84, 1   # layers=[120, 84], out_sz=1

LANE = 128


def _round_up(x, m):
    return (x + m - 1) // m * m


H1_PAD = _round_up(H1, LANE)           # 128
H2_PAD = _round_up(H2, LANE)           # 128


# ------------------------------- Pallas kernel ------------------------------ #

def mlp_fused_kernel(x_ref, w1_ref, b1_ref, w2_ref, b2_ref, w3_ref, b3_ref,
                     o_ref):
    """Fused swish(x@w1+b1) -> swish(.@w2+b2) -> sum(.*w3)+b3 for one row tile."""
    # fc1: cast the f32 row tile to bf16 in-register (HBM read stays f32),
    # bf16 MXU matmul over the unpadded K = 841, f32 accumulate.
    x = x_ref[...].astype(jnp.bfloat16)
    h = jnp.dot(x, w1_ref[...], preferred_element_type=jnp.float32)
    h = h + b1_ref[...]
    h = h * jax.nn.sigmoid(h)                      # Swish (EUP sigmoid, f32)

    # fc2: cast the f32 activation back to bf16 for the MXU.
    h = jnp.dot(h.astype(w2_ref.dtype), w2_ref[...],
                preferred_element_type=jnp.float32)
    h = h + b2_ref[...]
    h = h * jax.nn.sigmoid(h)

    # fc3 (out_features == 1): VPU multiply + cross-lane reduce instead of a
    # 1-column MXU matmul (avoids <1% MXU utilisation on a 1-lane result).
    y = jnp.sum(h * w3_ref[...], axis=-1, keepdims=True) + b3_ref[...]
    o_ref[...] = y.astype(o_ref.dtype)


# -------------------------------- call wrapper ------------------------------ #

def _fused_mlp_call(x2, kp, *, tm, grid_m):
    m = x2.shape[0]
    flops = 2 * m * (IN_FEATURES * H1_PAD + H1_PAD * H2_PAD + H2_PAD)
    trans = m * (H1_PAD + H2_PAD)                          # two sigmoids/row/lane
    bytes_accessed = (x2.size * 4                                   # f32 x
                      + kp["w1"].size * 2 + kp["w2"].size * 2       # bf16 w
                      + (kp["b1"].size + kp["b2"].size
                         + kp["w3"].size + kp["b3"].size) * 4       # f32
                      + m * 4)                                      # f32 out
    return pl.pallas_call(
        mlp_fused_kernel,
        out_shape=jax.ShapeDtypeStruct((m, 1), jnp.float32),
        grid=(grid_m,),
        in_specs=[
            # x row tile: lane dim equals the full (unpadded) 841 feature dim.
            pl.BlockSpec((tm, IN_FEATURES), lambda i: (i, 0)),
            pl.BlockSpec((IN_FEATURES, H1_PAD), lambda i: (0, 0)),  # w1 (resident)
            pl.BlockSpec((1, H1_PAD), lambda i: (0, 0)),            # b1
            pl.BlockSpec((H1_PAD, H2_PAD), lambda i: (0, 0)),       # w2
            pl.BlockSpec((1, H2_PAD), lambda i: (0, 0)),            # b2
            pl.BlockSpec((1, H2_PAD), lambda i: (0, 0)),            # w3 (row vec)
            pl.BlockSpec((1, 1), lambda i: (0, 0)),                 # b3
        ],
        out_specs=pl.BlockSpec((tm, 1), lambda i: (i, 0)),
        compiler_params=pltpu.CompilerParams(
            dimension_semantics=("parallel",),
            vmem_limit_bytes=32 * 1024 * 1024),
        cost_estimate=pl.CostEstimate(flops=flops, transcendentals=trans,
                                      bytes_accessed=bytes_accessed),
    )(x2, kp["w1"], kp["b1"], kp["w2"], kp["b2"], kp["w3"], kp["b3"])


def _pick_row_tile(m, row_tile):
    """Multiple-of-16 row tile; >=2 grid steps when possible (v7x megacore)."""
    if m <= 16:
        # Single block equal to the full row extent: no ragged edges at all.
        return m, 1
    m16 = _round_up(m, 16)
    tm = min(_round_up(row_tile, 16), _round_up(pl.cdiv(m16, 2), 16))
    return tm, pl.cdiv(m, tm)


def nn_linear_forward(kernel_params, x, *, row_tile=1024):
    """Matches NN_Linear.forward: view(-1, 841) -> fc1/swish -> fc2/swish -> fc3 -> squeeze(1)."""
    x2 = x.reshape(-1, IN_FEATURES)                # x.view(-1, in_features), no copy
    if x2.dtype != jnp.float32:
        x2 = x2.astype(jnp.float32)
    m = x2.shape[0]
    tm, grid_m = _pick_row_tile(m, row_tile)
    out = _fused_mlp_call(x2, kernel_params, tm=tm, grid_m=grid_m)
    return out[:, 0]                               # .squeeze(1)


# -------------------------------- parameters -------------------------------- #

def init_params(key):
    """PyTorch nn.Linear default init: U(-1/sqrt(fan_in), 1/sqrt(fan_in))."""
    def linear(k, fan_in, fan_out):
        kw, kb = jax.random.split(k)
        bound = 1.0 / (fan_in ** 0.5)
        w = jax.random.uniform(kw, (fan_in, fan_out), jnp.float32, -bound, bound)
        b = jax.random.uniform(kb, (fan_out,), jnp.float32, -bound, bound)
        return w, b
    k1, k2, k3 = jax.random.split(key, 3)
    w1, b1 = linear(k1, IN_FEATURES, H1)
    w2, b2 = linear(k2, H1, H2)
    w3, b3 = linear(k3, H2, OUT)
    return {"w1": w1, "b1": b1, "w2": w2, "b2": b2, "w3": w3, "b3": b3}


def prepare_kernel_params(p):
    """Zero-pad hidden dims to 128 lanes (exact: swish(0)=0, padded w2/w3 rows are 0);
    keep K = 841 unpadded; cast MXU operands to bf16, keep the epilogue f32."""
    w1 = jnp.zeros((IN_FEATURES, H1_PAD), jnp.float32).at[:, :H1].set(p["w1"])
    b1 = jnp.zeros((1, H1_PAD), jnp.float32).at[0, :H1].set(p["b1"])
    w2 = jnp.zeros((H1_PAD, H2_PAD), jnp.float32).at[:H1, :H2].set(p["w2"])
    b2 = jnp.zeros((1, H2_PAD), jnp.float32).at[0, :H2].set(p["b2"])
    w3 = jnp.zeros((1, H2_PAD), jnp.float32).at[0, :H2].set(p["w3"][:, 0])
    b3 = p["b3"].reshape(1, 1)
    return {"w1": w1.astype(jnp.bfloat16), "b1": b1,
            "w2": w2.astype(jnp.bfloat16), "b2": b2,
            "w3": w3, "b3": b3}


# --------------------------------- reference --------------------------------- #

def reference_forward(p, x):
    x2 = x.reshape(-1, IN_FEATURES).astype(jnp.float32)
    h = x2 @ p["w1"] + p["b1"]
    h = h * jax.nn.sigmoid(h)
    h = h @ p["w2"] + p["b2"]
    h = h * jax.nn.sigmoid(h)
    y = h @ p["w3"] + p["b3"]
    return y[:, 0]


# ----------------------------------- main ------------------------------------ #

if __name__ == "__main__":
    key = jax.random.PRNGKey(0)
    kparam_key, kx = jax.random.split(key)

    params = init_params(kparam_key)
    kernel_params = prepare_kernel_params(params)

    fwd = jax.jit(nn_linear_forward)

    # (batch=4, 1, 29, 29) -> view(-1, 841), consistent with in_sz=841 = 29*29.
    x = jax.random.normal(kx, (4, 1, 29, 29), jnp.float32)
    out = fwd(kernel_params, x)
    jax.block_until_ready(out)
    ref = reference_forward(params, x)
    assert out.shape == (4,), out.shape
    assert bool(jnp.all(jnp.isfinite(out)))
    # bf16 matmul operands with f32 accumulation: loose tolerance vs f32 ref.
    assert bool(jnp.allclose(out, ref, rtol=5e-2, atol=5e-2)), (out, ref)

    # Second batch exercises the multi-tile "parallel" grid (>=2 steps for v7x
    # megacore) and the ragged last row tile (no wrapper-side row padding).
    xb = jax.random.normal(jax.random.PRNGKey(1), (40, 1, 29, 29), jnp.float32)
    outb = jax.block_until_ready(fwd(kernel_params, xb))
    refb = reference_forward(params, xb)
    assert outb.shape == (40,), outb.shape
    assert bool(jnp.all(jnp.isfinite(outb)))
    assert bool(jnp.allclose(outb, refb, rtol=5e-2, atol=5e-2))

    print("KERNEL_OK")
</pallas_src>

<mosaic_0001>
module attributes {stable_mosaic.version = 11 : i64} {
  func.func @mlp_fused_kernel(%arg0: i32, %arg1: memref<4x841xf32, #tpu.memory_space<vmem>>, %arg2: memref<841x128xbf16, #tpu.memory_space<vmem>>, %arg3: memref<1x128xf32, #tpu.memory_space<vmem>>, %arg4: memref<128x128xbf16, #tpu.memory_space<vmem>>, %arg5: memref<1x128xf32, #tpu.memory_space<vmem>>, %arg6: memref<1x128xf32, #tpu.memory_space<vmem>>, %arg7: memref<1x1xf32, #tpu.memory_space<vmem>>, %arg8: memref<4x1xf32, #tpu.memory_space<vmem>>) attributes {dimension_semantics = [#tpu.dimension_semantics<parallel>], iteration_bounds = array<i64: 1>, scalar_prefetch = 0 : i64, scratch_operands = 0 : i64, tpu.core_type = #tpu.core_type<tc>, window_params = [{transform_indices = @transform_0, window_bounds = array<i64: 4, 841>}, {pipeline_mode = #tpu.pipeline_mode<synchronous>, transform_indices = @transform_1, window_bounds = array<i64: 841, 128>}, {pipeline_mode = #tpu.pipeline_mode<synchronous>, transform_indices = @transform_2, window_bounds = array<i64: 1, 128>}, {pipeline_mode = #tpu.pipeline_mode<synchronous>, transform_indices = @transform_3, window_bounds = array<i64: 128, 128>}, {pipeline_mode = #tpu.pipeline_mode<synchronous>, transform_indices = @transform_4, window_bounds = array<i64: 1, 128>}, {pipeline_mode = #tpu.pipeline_mode<synchronous>, transform_indices = @transform_5, window_bounds = array<i64: 1, 128>}, {pipeline_mode = #tpu.pipeline_mode<synchronous>, transform_indices = @transform_6, window_bounds = array<i64: 1, 1>}, {transform_indices = @transform_7, window_bounds = array<i64: 4, 1>}]} {
    %c0 = arith.constant 0 : index
    %c0_0 = arith.constant 0 : index
    %0 = vector.load %arg1[%c0, %c0_0] : memref<4x841xf32, #tpu.memory_space<vmem>>, vector<4x841xf32>
    %1 = arith.truncf %0 : vector<4x841xf32> to vector<4x841xbf16>
    %c0_1 = arith.constant 0 : index
    %c0_2 = arith.constant 0 : index
    %2 = vector.load %arg2[%c0_1, %c0_2] : memref<841x128xbf16, #tpu.memory_space<vmem>>, vector<841x128xbf16>
    %cst = arith.constant dense<0.000000e+00> : vector<4x128xf32>
    %3 = tpu.matmul %1, %2, %cst {dimension_numbers = #tpu.dot_dimension_numbers<[1], [0], [0], [1], [0, 0, 1, 1], [], []>} : vector<4x841xbf16>, vector<841x128xbf16>, vector<4x128xf32> -> vector<4x128xf32>
    %c0_3 = arith.constant 0 : index
    %c0_4 = arith.constant 0 : index
    %4 = vector.load %arg3[%c0_3, %c0_4] : memref<1x128xf32, #tpu.memory_space<vmem>>, vector<1x128xf32>
    %5 = vector.broadcast %4 : vector<1x128xf32> to vector<4x128xf32>
    %6 = arith.addf %3, %5 : vector<4x128xf32>
    %7 = arith.negf %6 : vector<4x128xf32>
    %8 = math.exp %7 : vector<4x128xf32>
    %cst_5 = arith.constant 1.000000e+00 : f32
    %9 = vector.broadcast %cst_5 : f32 to vector<4x128xf32>
    %10 = arith.addf %9, %8 : vector<4x128xf32>
    %11 = arith.divf %9, %10 : vector<4x128xf32>
    %12 = arith.mulf %6, %11 : vector<4x128xf32>
    %13 = arith.truncf %12 : vector<4x128xf32> to vector<4x128xbf16>
    %c0_6 = arith.constant 0 : index
    %c0_7 = arith.constant 0 : index
    %14 = vector.load %arg4[%c0_6, %c0_7] : memref<128x128xbf16, #tpu.memory_space<vmem>>, vector<128x128xbf16>
    %cst_8 = arith.constant dense<0.000000e+00> : vector<4x128xf32>
    %15 = tpu.matmul %13, %14, %cst_8 {dimension_numbers = #tpu.dot_dimension_numbers<[1], [0], [0], [1], [0, 0, 1, 1], [], []>} : vector<4x128xbf16>, vector<128x128xbf16>, vector<4x128xf32> -> vector<4x128xf32>
    %c0_9 = arith.constant 0 : index
    %c0_10 = arith.constant 0 : index
    %16 = vector.load %arg5[%c0_9, %c0_10] : memref<1x128xf32, #tpu.memory_space<vmem>>, vector<1x128xf32>
    %17 = vector.broadcast %16 : vector<1x128xf32> to vector<4x128xf32>
    %18 = arith.addf %15, %17 : vector<4x128xf32>
    %19 = arith.negf %18 : vector<4x128xf32>
    %20 = math.exp %19 : vector<4x128xf32>
    %cst_11 = arith.constant 1.000000e+00 : f32
    %21 = vector.broadcast %cst_11 : f32 to vector<4x128xf32>
    %22 = arith.addf %21, %20 : vector<4x128xf32>
    %23 = arith.divf %21, %22 : vector<4x128xf32>
    %24 = arith.mulf %18, %23 : vector<4x128xf32>
    %c0_12 = arith.constant 0 : index
    %c0_13 = arith.constant 0 : index
    %25 = vector.load %arg6[%c0_12, %c0_13] : memref<1x128xf32, #tpu.memory_space<vmem>>, vector<1x128xf32>
    %26 = vector.broadcast %25 : vector<1x128xf32> to vector<4x128xf32>
    %27 = arith.mulf %24, %26 : vector<4x128xf32>
    %cst_14 = arith.constant dense<0.000000e+00> : vector<4xf32>
    %28 = vector.multi_reduction <add>, %27, %cst_14 [1] : vector<4x128xf32> to vector<4xf32>
    %29 = vector.shape_cast %28 : vector<4xf32> to vector<4x1xf32>
    %c0_15 = arith.constant 0 : index
    %c0_16 = arith.constant 0 : index
    %30 = vector.load %arg7[%c0_15, %c0_16] : memref<1x1xf32, #tpu.memory_space<vmem>>, vector<1x1xf32>
    %31 = vector.broadcast %30 : vector<1x1xf32> to vector<4x1xf32>
    %32 = arith.addf %29, %31 : vector<4x1xf32>
    %c0_17 = arith.constant 0 : index
    %c0_18 = arith.constant 0 : index
    %33 = vector.load %arg8[%c0_17, %c0_18] : memref<4x1xf32, #tpu.memory_space<vmem>>, vector<4x1xf32>
    tpu.vector_store %arg8[%c0_17, %c0_18], %32 {strides = array<i32>} : memref<4x1xf32, #tpu.memory_space<vmem>>, vector<4x1xf32>,
    return
  }
  func.func @transform_0(%arg0: i32) -> (i32, i32) {
    %c0_i32 = arith.constant 0 : i32
    %c0_i32_0 = arith.constant 0 : i32
    return %arg0, %c0_i32 : i32, i32
  }
  func.func @transform_1(%arg0: i32) -> (i32, i32) {
    %c0_i32 = arith.constant 0 : i32
    %c0_i32_0 = arith.constant 0 : i32
    %c0_i32_1 = arith.constant 0 : i32
    return %c0_i32, %c0_i32_0 : i32, i32
  }
  func.func @transform_2(%arg0: i32) -> (i32, i32) {
    %c0_i32 = arith.constant 0 : i32
    %c0_i32_0 = arith.constant 0 : i32
    %c0_i32_1 = arith.constant 0 : i32
    return %c0_i32, %c0_i32_0 : i32, i32
  }
  func.func @transform_3(%arg0: i32) -> (i32, i32) {
    %c0_i32 = arith.constant 0 : i32
    %c0_i32_0 = arith.constant 0 : i32
    %c0_i32_1 = arith.constant 0 : i32
    return %c0_i32, %c0_i32_0 : i32, i32
  }
  func.func @transform_4(%arg0: i32) -> (i32, i32) {
    %c0_i32 = arith.constant 0 : i32
    %c0_i32_0 = arith.constant 0 : i32
    %c0_i32_1 = arith.constant 0 : i32
    return %c0_i32, %c0_i32_0 : i32, i32
  }
  func.func @transform_5(%arg0: i32) -> (i32, i32) {
    %c0_i32 = arith.constant 0 : i32
    %c0_i32_0 = arith.constant 0 : i32
    %c0_i32_1 = arith.constant 0 : i32
    return %c0_i32, %c0_i32_0 : i32, i32
  }
  func.func @transform_6(%arg0: i32) -> (i32, i32) {
    %c0_i32 = arith.constant 0 : i32
    %c0_i32_0 = arith.constant 0 : i32
    %c0_i32_1 = arith.constant 0 : i32
    return %c0_i32, %c0_i32_0 : i32, i32
  }
  func.func @transform_7(%arg0: i32) -> (i32, i32) {
    %c0_i32 = arith.constant 0 : i32
    %c0_i32_0 = arith.constant 0 : i32
    return %arg0, %c0_i32 : i32, i32
  }
}

</mosaic_0001>

<bundles_post_ra>
// kernel: nn_linear_forward.1
= control target key start
LH: loop header
LB: loop body
LE: loop exit
PB: predicated region body
PF: predicated region fallthrough
CT: control target
= control target key end

     0   :  { %s1218_s0 = inlined_call_operand.vmem [shape: f32[4,841], index: 0, kind: input, shape index: {}]   ;;  %s1219_s1 = inlined_call_operand.hbm [shape: bf16[841,128], index: 1, kind: input, shape index: {}]   ;;  %s1220_s2 = inlined_call_operand.vmem [shape: f32[1,128], index: 2, kind: input, shape index: {}]   ;;  %s1221_s3 = inlined_call_operand.vmem [shape: bf16[128,128], index: 3, kind: input, shape index: {}]   ;;  %s1222_s4 = inlined_call_operand.vmem [shape: f32[1,128], index: 4, kind: input, shape index: {}]   ;;  %s1223_s5 = inlined_call_operand.vmem [shape: f32[1,128], index: 5, kind: input, shape index: {}]   ;;  %s1224_s6 = inlined_call_operand.<no memory space> [shape: f32[1,1], index: 6, kind: input, shape index: {}]   ;;  %s1225_s7 = inlined_call_operand.vmem [shape: f32[4,1], index: 7, kind: output, shape index: {}]  }
   0x1   :  { %v12_v0 = vstv %s1224_s6 }
   0x2   :  { %13 = vst [vmem:[#allocation2] sm:$0x1] %v12_v0 }
   0x3   :  { %14 = vsyncpa [#allocation4], 0  ;;  %s1099_s26 = smov [#allocation3]  }
   0x4   :  { %s22_s27 = sshll.u32 %s1099_s26, 4  ;;  %s23_s27 = int_to_ptr.vmem [resolvable:$true] %s22_s27 }
   0x5   :  { %s1085_s28 = scalar_lea.vmem %s23_s27, 6784  ;;  %p1090_p1 = scmp.lt.s32.totalorder %s23_s27, %s23_s27 }
   0x6   :  { %p1086_p0 = scmp.ne.s32.totalorder %s23_s27, %s1085_s28  ;;  %p1091_p2 = scmp.lt.s32.totalorder %s1085_s28, %s1085_s28 }
   0x8   :  { %p1092_p3 = por %p1091_p2, %p1090_p1 }
   0xa   :  { %p1093_p4 = pnand %p1092_p3, %p1086_p0 }
   0xc   :  { %1096 = shalt.err (!%p1093_p4)
}
   0xd   :  { %s1100_s29 = smov 64   ;;  %s1101_s30 = smov 4  }
   0xe   :  { %28 = dma.hbm_to_vmem [thread:$0]  %s1219_s1, 6784, %s23_s27, [#allocation4], %s1100_s29, %s1100_s29, %s1101_s30  }
   0xf   :  { %1097 = dma.done.wait [#allocation4], 6784  }
  0x10   :  { %1098 = vsyncadd [#allocation4], 4294960512  ;;  %v1005_v1 = vld [vmem:[#allocation3 + $0x78] sm:$0xff]   ;;  %v1009_v5 = vld [vmem:[#allocation3 + $0x70] sm:$0xff]   ;;  %vm497_vm0 = vcmask 1043456   ;;  %v1102_v43 = vmov 0.0  }
  0x11   :  { %v1006_v2 = vld [vmem:[#allocation3 + $0x38] sm:$0xff]   ;;  %884 = vmatprep.subr.bf16.mxu0 %v1005_v1  ;;  %v1010_v6 = vld [vmem:[#allocation3 + $0x30] sm:$0xff]   ;;  %v1013_v9 = vld [vmem:[#allocation3 + $0x68] sm:$0xff]   ;;  %vm498_vm1 = vcmask 1044480   ;;  %v1103_v45 = vmov 65535   ;;  %vm1104_vm2 = vmmov 0  }
  0x12   :  { %v1007_v3 = vld [vmem:[#allocation3 + $0xf8] sm:$0xff]   ;;  %885 = vmatpush3.bf16.msra.mxu0 %v1006_v2  ;;  %v1011_v7 = vld [vmem:[#allocation3 + $0xf0] sm:$0xff]   ;;  %v1014_v10 = vld [vmem:[#allocation3 + $0x28] sm:$0xff]   ;;  %v499_v46 = vsel %vm497_vm0, 4294967295, %v1103_v45  ;;  %vm493_vm3 = vcmask 596992   ;;  %vm809_vm4 = vcmask 3072  }
  0x13   :  { %v1008_v4 = vld [vmem:[#allocation3 + $0xb8] sm:$0xff]   ;;  %906 = vmatprep.subr.bf16.mxu1 %v1007_v3  ;;  %886 = vmatprep.subr.bf16.mxu0 %v1009_v5  ;;  %v1012_v8 = vld [vmem:[#allocation3 + $0xb0] sm:$0xff]   ;;  %v1015_v11 = vld [vmem:[#allocation3 + $0xe8] sm:$0xff]   ;;  %v500_v49 = vsel %vm498_vm1, %v499_v46, 0 }
  0x14   :  { %907 = vmatpush3.bf16.msra.mxu1 %v1008_v4  ;;  %v1016_v12 = vld [vmem:[#allocation3 + $0xa8] sm:$0xff]   ;;  %v1017_v13 = vld [vmem:[#allocation3 + $0x60] sm:$0xff]   ;;  %v1021_v17 = vld [vmem:[#allocation3 + $0x58] sm:$0xff]  }
  0x15   :  { %908 = vmatprep.subr.bf16.mxu1 %v1011_v7  ;;  %v1018_v14 = vld [vmem:[#allocation3 + $0x20] sm:$0xff]   ;;  %v1022_v18 = vld [vmem:[#allocation3 + $0x18] sm:$0xff]   ;;  %v1025_v21 = vld [vmem:[#allocation3 + $0x50] sm:$0xff]  }
  0x16   :  { %887 = vmatpush3.bf16.msra.mxu0 %v1010_v6  ;;  %v1019_v15 = vld [vmem:[#allocation3 + $0xe0] sm:$0xff]   ;;  %v1023_v19 = vld [vmem:[#allocation3 + $0xd8] sm:$0xff]   ;;  %v1026_v22 = vld [vmem:[#allocation3 + $0x10] sm:$0xff]  }
  0x17   :  { %888 = vmatprep.subr.bf16.mxu0 %v1013_v9  ;;  %v1020_v16 = vld [vmem:[#allocation3 + $0xa0] sm:$0xff]   ;;  %v1024_v20 = vld [vmem:[#allocation3 + $0x98] sm:$0xff]   ;;  %v1027_v23 = vld [vmem:[#allocation3 + $0xd0] sm:$0xff]  }
  0x18   :  { %909 = vmatpush3.bf16.msra.mxu1 %v1012_v8  ;;  %v1028_v24 = vld [vmem:[#allocation3 + $0x90] sm:$0xff]   ;;  %v1029_v25 = vld [vmem:[#allocation3 + $0x48] sm:$0xff]   ;;  %v1033_v29 = vld [vmem:[#allocation3 + $0x40] sm:$0xff]  }
  0x19   :  { %910 = vmatprep.subr.bf16.mxu1 %v1015_v11  ;;  %v1030_v26 = vld [vmem:[#allocation3 + $0x8] sm:$0xff]   ;;  %v1034_v30 = vld [vmem:[#allocation3] sm:$0xff]   ;;  %v1038_v36 = vld [vmem:[#allocation3 + $0x178] sm:$0xff]  }
  0x1a   :  { %889 = vmatpush3.bf16.msra.mxu0 %v1014_v10  ;;  %v1031_v27 = vld [vmem:[#allocation3 + $0xc8] sm:$0xff]   ;;  %v1035_v31 = vld [vmem:[#allocation3 + $0xc0] sm:$0xff]   ;;  %v1040_v40 = vld [vmem:[#allocation3 + $0x138] sm:$0xff]  }
  0x1b   :  { %890 = vmatprep.subr.bf16.mxu0 %v1017_v13  ;;  %v1032_v28 = vld [vmem:[#allocation3 + $0x88] sm:$0xff]   ;;  %v43_v32 = vld [vmem:[%s1218_s0] sm:$0xff]  ;;  %v1041_v42 = vld [vmem:[#allocation3 + $0x170] sm:$0xff]  }
  0x1c   :  { %911 = vmatpush3.bf16.msra.mxu1 %v1016_v12  ;;  %v50_v33 = vcombine.high %v43_v32, %v43_v32  ;;  %v1037_v34 = vld [vmem:[#allocation3 + $0x80] sm:$0xff]   ;;  %v56_v35 = vpack.c.bf16 %v43_v32, %v43_v32  ;;  %v1042_v47 = vld [vmem:[#allocation3 + $0x130] sm:$0xff]   ;;  %v1043_v48 = vld [vmem:[#allocation3 + $0x168] sm:$0xff]  }
  0x1d   :  { %912 = vmatprep.subr.bf16.mxu1 %v1019_v15  ;;  %v44_v37 = vld [vmem:[%s1218_s0 + $0x8] sm:$0xff]  ;;  %v1047_v50 = vld [vmem:[#allocation3 + $0x1a0] sm:$0x1f]   ;;  %v1050_v54 = vld [vmem:[#allocation3 + $0x198] sm:$0xff]  }
  0x1e   :  { %891 = vmatpush3.bf16.msra.mxu0 %v1018_v14  ;;  %v57_v38 = vpack.c.bf16 %v50_v33, %v50_v33  ;;  %v51_v39 = vcombine.high %v44_v37, %v44_v37  ;;  %v58_v41 = vpack.c.bf16 %v44_v37, %v44_v37  ;;  %v1044_v51 = vld [vmem:[#allocation3 + $0x128] sm:$0xff]   ;;  %v1045_v52 = vld [vmem:[#allocation3 + $0x160] sm:$0xff]   ;;  %v502_v53 = vand.u32 %v1047_v50, %v500_v49  ;;  %v1048_v56 = vld [vmem:[#allocation3 + $0x158] sm:$0xff]  }
  0x1f   :  { %892 = vmatprep.subr.bf16.mxu0 %v1021_v17  ;;  %v1046_v55 = vld [vmem:[#allocation3 + $0x120] sm:$0xff]   ;;  %v1053_v57 = vld [vmem:[#allocation3 + $0x190] sm:$0xff]   ;;  %v1049_v58 = vld [vmem:[#allocation3 + $0x118] sm:$0xff]  }
  0x20   :  { %913 = vmatpush3.bf16.msra.mxu1 %v1020_v16  ;;  %536 = vmatprep.mubr.bf16.mxu0 %v57_v38  ;;  %v59_v44 = vpack.c.bf16 %v51_v39, %v51_v39  ;;  %v1051_v59 = vld [vmem:[#allocation3 + $0x150] sm:$0xff]   ;;  %v1056_v61 = vld [vmem:[#allocation3 + $0x188] sm:$0xff]   ;;  %v1059_v1 = vld [vmem:[#allocation3 + $0x180] sm:$0xff]  }
  0x21   :  { %914 = vmatprep.subr.bf16.mxu1 %v1023_v19  ;;  %v1052_v60 = vld [vmem:[#allocation3 + $0x110] sm:$0xff]   ;;  %v1054_v63 = vld [vmem:[#allocation3 + $0x148] sm:$0xff]   ;;  %v1057_v5 = vld [vmem:[#allocation3 + $0x140] sm:$0xff]  }
  0x22   :  { %893 = vmatpush3.bf16.msra.mxu0 %v1022_v18  ;;  %576 = vmatprep.mubr.bf16.mxu1 %v59_v44  ;;  %v45_v62 = vld [vmem:[%s1218_s0 + $0x10] sm:$0xff]  ;;  %v46_v2 = vld [vmem:[%s1218_s0 + $0x18] sm:$0xf]  ;;  %v1058_v7 = vld [vmem:[#allocation3 + $0x100] sm:$0xff]  }
  0x23   :  { %894 = vmatprep.subr.bf16.mxu0 %v1025_v21  ;;  %v52_v0 = vcombine.high %v45_v62, %v45_v62  ;;  %v1055_v3 = vld [vmem:[#allocation3 + $0x108] sm:$0xff]   ;;  %v62_v6 = vpack.c.bf16 %v46_v2, %v46_v2  ;;  %v60_v8 = vpack.c.bf16 %v45_v62, %v45_v62  ;;  %v1061_v9 = vld [vmem:[%s1221_s3 + $0x38] sm:$0xff]   ;;  %v1064_v12 = vld [vmem:[%s1221_s3 + $0x20] sm:$0xff]  }
  0x24   :  { %915 = vmatpush3.bf16.msra.mxu1 %v1024_v20  ;;  %v1062_v10 = vld [vmem:[%s1221_s3 + $0x30] sm:$0xff]   ;;  %v1063_v11 = vld [vmem:[%s1221_s3 + $0x28] sm:$0xff]   ;;  %v1065_v13 = vld [vmem:[%s1221_s3 + $0x18] sm:$0xff]  }
  0x25   :  { %916 = vmatprep.subr.bf16.mxu1 %v1027_v23  ;;  %v61_v4 = vpack.c.bf16 %v52_v0, %v52_v0  ;;  %v1066_v14 = vld [vmem:[%s1221_s3 + $0x10] sm:$0xff]   ;;  %v1067_v15 = vld [vmem:[%s1221_s3 + $0x8] sm:$0xff]   ;;  %v1068_v16 = vld [vmem:[%s1221_s3] sm:$0xff]  }
  0x26   :  { %895 = vmatpush3.bf16.msra.mxu0 %v1026_v22 }
  0x27   :  { %896 = vmatprep.subr.bf16.mxu0 %v1029_v25 }
  0x28   :  { %917 = vmatpush3.bf16.msra.mxu1 %v1028_v24 }
  0x29   :  { %918 = vmatprep.subr.bf16.mxu1 %v1031_v27  ;;  %v816_v27 = vld [vmem:[%s1220_s2] ss:$0 sm:$0xff] }
  0x2a   :  { %897 = vmatpush3.bf16.msra.mxu0 %v1030_v26 }
  0x2b   :  { %898 = vmatprep.subr.bf16.mxu0 %v1033_v29 }
  0x2c   :  { %919 = vmatpush3.bf16.msra.mxu1 %v1032_v28 }
  0x2d   :  { %920 = vmatprep.subr.bf16.mxu1 %v1035_v31 }
  0x2e   :  { %899 = vmatpush3.bf16.msra.mxu0 %v1034_v30 }
  0x2f   :  { %928 = vmatprep.subr.bf16.mxu0 %v1038_v36 }
  0x30   :  { %921 = vmatpush3.bf16.msra.mxu1 %v1037_v34 }
  0x31   :  { %965 = vmatprep.subr.bf16.mxu1 %v1102_v43  ;;  %537 = vmatmul.mubr.bf16.vlgmr.msra.gmra.mxu0 %v56_v35 }
  0x32   :  { %929 = vmatpush3.bf16.msra.mxu0 %v1040_v40  ;;  %616 = vmatprep.mubr.bf16.mxu0 %v61_v4 }
  0x33   :  { %577 = vmatmul.mubr.bf16.vlgmr.msra.gmra.mxu1 %v58_v41  ;;  %930 = vmatprep.subr.bf16.mxu0 %v1041_v42 }
  0x34   :  { %975 = vmatprep.mubr.msk.bf16.mxu1 %vm1104_vm2, %v1102_v43  ;;  %966 = vmatpush3.bf16.msra.mxu1 %v502_v53 }
  0x35   :  { %967 = vmatprep.subr.bf16.mxu1 %v1102_v43 }
  0x36   :  { %931 = vmatpush3.bf16.msra.mxu0 %v1042_v47  ;;  %v872_v47 = vld [vmem:[%s1222_s4] ss:$0 sm:$0xff] }
  0x37   :  { %932 = vmatprep.subr.bf16.mxu0 %v1043_v48 }
  0x38   :  { %968 = vmatpush3.bf16.msra.mxu1 %v1050_v54 }
  0x39   :  { %969 = vmatprep.subr.bf16.mxu1 %v1102_v43 }
  0x3a   :  { %933 = vmatpush3.bf16.msra.mxu0 %v1044_v51 }
  0x3b   :  { %934 = vmatprep.subr.bf16.mxu0 %v1045_v52 }
  0x3c   :  { %970 = vmatpush3.bf16.msra.mxu1 %v1053_v57  ;;  %v882_v57 = vld [vmem:[%s1223_s5] ss:$0 sm:$0xff] }
  0x3d   :  { %971 = vmatprep.subr.bf16.mxu1 %v1102_v43 }
  0x3e   :  { %935 = vmatpush3.bf16.msra.mxu0 %v1046_v55 }
  0x3f   :  { %936 = vmatprep.subr.bf16.mxu0 %v1048_v56 }
  0x40   :  { %972 = vmatpush3.bf16.msra.mxu1 %v1056_v61  ;;  %v883_v61 = vld [vmem:[#allocation2] ss:$0 sm:$0xff] }
  0x41   :  { %973 = vmatprep.subr.bf16.mxu1 %v1102_v43 }
  0x42   :  { %937 = vmatpush3.bf16.msra.mxu0 %v1049_v58 }
  0x43   :  { %938 = vmatprep.subr.bf16.mxu0 %v1051_v59 }
  0x44   :  { %974 = vmatpush3.bf16.msra.mxu1 %v1059_v1 }
  0x45   :  { %979 = vmatprep.subr.bf16.mxu1 %v1102_v43 }
  0x46   :  { %939 = vmatpush3.bf16.msra.mxu0 %v1052_v60 }
  0x47   :  { %940 = vmatprep.subr.bf16.mxu0 %v1054_v63  ;;  %976 = vmatmul.mubr.msk.bf16.vlgmr.msra.gmra.mxu1 %vm493_vm3, %v62_v6 }
  0x48   :  { %995 = vmatprep.mubr.msk.bf16.mxu1 %vm1104_vm2, %v1102_v43  ;;  %980 = vmatpush3.bf16.msra.mxu1 %v1061_v9 }
  0x49   :  { %981 = vmatprep.subr.bf16.mxu1 %v1102_v43 }
  0x4a   :  { %941 = vmatpush3.bf16.msra.mxu0 %v1055_v3 }
  0x4b   :  { %942 = vmatprep.subr.bf16.mxu0 %v1057_v5 }
  0x4c   :  { %982 = vmatpush3.bf16.msra.mxu1 %v1062_v10 }
  0x4d   :  { %983 = vmatprep.subr.bf16.mxu1 %v1102_v43 }
  0x4e   :  { %943 = vmatpush3.bf16.msra.mxu0 %v1058_v7 }
  0x50   :  { %984 = vmatpush3.bf16.msra.mxu1 %v1063_v11 }
  0x51   :  { %617 = vmatmul.mubr.bf16.vlgmr.msra.gmra.mxu0 %v60_v8  ;;  %985 = vmatprep.subr.bf16.mxu1 %v1102_v43 }
  0x54   :  { %986 = vmatpush3.bf16.msra.mxu1 %v1064_v12 }
  0x55   :  { %987 = vmatprep.subr.bf16.mxu1 %v1102_v43 }
  0x58   :  { %988 = vmatpush3.bf16.msra.mxu1 %v1065_v13 }
  0x59   :  { %989 = vmatprep.subr.bf16.mxu1 %v1102_v43 }
  0x5c   :  { %990 = vmatpush3.bf16.msra.mxu1 %v1066_v14 }
  0x5d   :  { %991 = vmatprep.subr.bf16.mxu1 %v1102_v43 }
  0x60   :  { %992 = vmatpush3.bf16.msra.mxu1 %v1067_v15 }
  0x61   :  { %993 = vmatprep.subr.bf16.mxu1 %v1102_v43 }
  0x64   :  { %994 = vmatpush3.bf16.msra.mxu1 %v1068_v16 }
  0xf1   :  { %v900_v17 = vpop.f32.mrf.mxu0 }
  0xf3   :  { %v901_v18 = vpop.f32.mrf.mxu0  ;;  %v922_v19 = vpop.f32.mrf.mxu1 }
  0xf4   :  { %v902_v25 = vadd.f32 %v901_v18, %v900_v17 }
  0xf5   :  { %v903_v20 = vpop.f32.mrf.mxu0  ;;  %v923_v21 = vpop.f32.mrf.mxu1 }
  0xf6   :  { %v539_v29 = vadd.f32 %v902_v25, %v816_v27  ;;  %v924_v30 = vadd.f32 %v923_v21, %v922_v19 }
  0xf7   :  { %v904_v22 = vpop.f32.mrf.mxu0  ;;  %v925_v23 = vpop.f32.mrf.mxu1 }
  0xf8   :  { %v579_v35 = vadd.f32 %v924_v30, %v539_v29 }
  0xf9   :  { %v926_v24 = vpop.f32.mrf.mxu1 }
 0x107   :  { %v658_v26 = vpop.f32.mrf.mxu1 }
 0x109   :  { %v977_v28 = vpop.f32.mrf.mxu1 }
 0x10b   :  { %v661_v31 = vpop.f32.mrf.mxu1 }
 0x10d   :  { %v978_v33 = vpop.f32.mrf.mxu1 }
 0x111   :  { %v944_v32 = vpop.f32.mrf.mxu0 }
 0x113   :  { %v945_v34 = vpop.f32.mrf.mxu0 }
 0x114   :  { %v946_v36 = vadd.f32 %v945_v34, %v944_v32 }
 0x115   :  { %v947_v37 = vpop.f32.mrf.mxu0 }
 0x116   :  { %v619_v38 = vadd.f32 %v946_v36, %v579_v35 }
 0x117   :  { %v948_v39 = vpop.f32.mrf.mxu0 }
 0x118   :  { %v659_v40 = vadd.f32 %v658_v26, %v619_v38 }
 0x11a   :  { %v871_v41 = vmul.f32 -1.442695, %v659_v40 }
 0x11c   :  { %1069 = vpow2.f32 %v871_v41 }
 0x129   :  { %v1070_v42 = vpop.eup %1069 }
 0x12a   :  { %v667_v43 = vadd.f32 1.0, %v1070_v42 }
 0x12c   :  { %1071 = vrcp.f32 %v667_v43 }
 0x139   :  { %v1072_v44 = vpop.eup %1071 }
 0x13a   :  { %v670_v45 = vmul.f32 %v1072_v44, %v659_v40 }
 0x13c   :  { %v671_v46 = vpack.c.bf16 %v670_v45, %v670_v45 }
 0x13e   :  { %996 = vmatmul.mubr.bf16.vlgmr.msra.gmra.mxu1 %v671_v46 }
 0x1fe   :  { %v777_v48 = vpop.f32.mrf.mxu1 }
 0x1ff   :  { %v778_v49 = vadd.f32 %v872_v47, %v777_v48 }
 0x200   :  { %v997_v50 = vpop.f32.mrf.mxu1 }
 0x201   :  { %v881_v51 = vmul.f32 -1.442695, %v778_v49 }
 0x202   :  { %v780_v52 = vpop.f32.mrf.mxu1 }
 0x203   :  { %1073 = vpow2.f32 %v881_v51 }
 0x204   :  { %v998_v53 = vpop.f32.mrf.mxu1 }
 0x210   :  { %v1074_v54 = vpop.eup %1073 }
 0x211   :  { %v786_v55 = vadd.f32 1.0, %v1074_v54 }
 0x213   :  { %1075 = vrcp.f32 %v786_v55 }
 0x220   :  { %v1076_v56 = vpop.eup %1075 }
 0x221   :  { %v789_v58 = vmul.f32 %v1076_v56, %v778_v49 }
 0x223   :  { %v797_v59 = vmul.f32 %v882_v57, %v789_v58 }
 0x225   :  { %v798_v60 = vsel %vm497_vm0, %v797_v59, 0.0 }
 0x226   :  { %799 = vadd.xlane.f32.xlu0 %v798_v60 }
 0x2af   :  { %v800_v62 = vpop.xlane.xlu0 %799 }
 0x2b0   :  { %v808_v63 = vadd.f32 %v883_v61, %v800_v62 }
 0x2b2   :  { %810 = vst.msk [vmem:[%s1225_s7] sm:$0xf] %vm809_vm4, %v808_v63 }
 0x2b3   :  { %815 = vsyncpa [#allocation4], 1 }

</bundles_post_ra>
